<compile_context>
chip_gen: v6e
topology: v6e:2x2x1
jax: 0.10.0
libtpu: 0.0.40
codegen_flags: <defaults>
</compile_context>

<pallas_src>
import jax
import jax.numpy as jnp
from jax.experimental import pallas as pl
from jax.experimental.pallas import tpu as pltpu


def _mlp_fwd_kernel(x_ref, w1_ref, b1_ref, w2_ref, b2_ref, o_ref):
    # x_ref : (tm, d_in)      activations tile (streamed per grid step)
    # w1_ref: (d_in, d_h)     resident across grid steps (single-buffered)
    # b1_ref: (1, d_h)
    # w2_ref: (d_h, d_out)    resident
    # b2_ref: (1, d_out)
    x = x_ref[...]                                            # native dtype (bf16)

    # Layer 1: MXU matmul (bf16 in, f32 accumulate), f32 epilogue (v5e-safe).
    h = jnp.dot(x, w1_ref[...], preferred_element_type=jnp.float32)
    h = jnp.maximum(h + b1_ref[...].astype(jnp.float32), 0.0)

    # Layer 2: cast back to the native matmul dtype for the second MXU pass.
    h = h.astype(x.dtype)
    y = jnp.dot(h, w2_ref[...], preferred_element_type=jnp.float32)
    y = y + b2_ref[...].astype(jnp.float32)

    o_ref[...] = y.astype(o_ref.dtype)


def mlp_forward_pallas(x, w1, b1, w2, b2, *, tm=512):
    """Fused MLP forward.

    x : (batch, d_in)
    w1: (d_in, d_hidden)   -- pre-transposed nn.Linear weight (in, out)
    b1: (1, d_hidden)
    w2: (d_hidden, d_out)  -- pre-transposed nn.Linear weight (in, out)
    b2: (1, d_out)
    """
    batch, d_in = x.shape
    d_hidden = w1.shape[1]
    d_out = w2.shape[1]

    # Tile sizing: large tiles amortize the ~0.35 us per-grid-step overhead.
    # If the batch fits in one tile, take it whole (full-extent block is
    # always layout-legal); otherwise keep tm a multiple of 8 (sublane).
    if tm >= batch:
        tm = batch
    else:
        tm = max(8, (tm // 8) * 8)
    grid = (pl.cdiv(batch, tm),)

    itemsize = x.dtype.itemsize

    # Explicit scoped-VMEM budget: single-buffered weights/biases, double-
    # buffered activation/output tiles, f32 intermediates, plus headroom.
    weight_bytes = (w1.size + b1.size + w2.size + b2.size) * itemsize
    act_bytes = 2 * tm * d_in * itemsize            # x tile, double-buffered
    out_bytes = 2 * tm * d_out * itemsize           # out tile, double-buffered
    interm_bytes = tm * max(d_hidden, d_out) * 4 * 2  # f32 h / y live values
    vmem_limit = weight_bytes + act_bytes + out_bytes + interm_bytes
    vmem_limit = int(min(max(2 * vmem_limit, 32 << 20), 96 << 20))

    # Advisory cost hint for XLA's scheduler.
    flops = 2 * batch * d_in * d_hidden + 2 * batch * d_hidden * d_out
    bytes_accessed = (
        x.size * itemsize + weight_bytes + batch * d_out * itemsize
    )
    cost = pl.CostEstimate(flops=flops, transcendentals=0,
                           bytes_accessed=bytes_accessed)

    return pl.pallas_call(
        _mlp_fwd_kernel,
        out_shape=jax.ShapeDtypeStruct((batch, d_out), x.dtype),
        grid=grid,
        in_specs=[
            # activations: one batch tile per grid step (default 2-deep
            # pipelining; bump to pl.Buffered(3) only if xprof shows the
            # activation DMA still exposed at large batch).
            pl.BlockSpec((tm, d_in), lambda i: (i, 0)),
            # weights / biases: constant index_map -> DMA'd once and VMEM-
            # resident; single buffer (no point double-buffering constants).
            pl.BlockSpec((d_in, d_hidden), lambda i: (0, 0),
                         pipeline_mode=pl.Buffered(1)),
            pl.BlockSpec((1, d_hidden), lambda i: (0, 0),
                         pipeline_mode=pl.Buffered(1)),
            pl.BlockSpec((d_hidden, d_out), lambda i: (0, 0),
                         pipeline_mode=pl.Buffered(1)),
            pl.BlockSpec((1, d_out), lambda i: (0, 0),
                         pipeline_mode=pl.Buffered(1)),
        ],
        out_specs=pl.BlockSpec((tm, d_out), lambda i: (i, 0)),
        compiler_params=pltpu.CompilerParams(
            dimension_semantics=("parallel",),   # megacore-shard batch tiles (v7x)
            vmem_limit_bytes=vmem_limit,
        ),
        cost_estimate=cost,
    )(x, w1, b1, w2, b2)


class SimpleMLP:
    """The wrapped `module` (stand-in for an arbitrary torch.nn.Module).

    Weights are stored in (in_features, out_features) layout, i.e. the
    one-time wrapper-side transpose of torch.nn.Linear's (out, in) weight.
    """

    def __init__(self, key, d_in=128, d_hidden=128, d_out=128,
                 dtype=jnp.bfloat16):
        k1, k2, k3, k4 = jax.random.split(key, 4)
        self.w1 = (jax.random.normal(k1, (d_in, d_hidden), jnp.float32)
                   * 0.05).astype(dtype)
        self.b1 = (jax.random.normal(k2, (1, d_hidden), jnp.float32)
                   * 0.01).astype(dtype)
        self.w2 = (jax.random.normal(k3, (d_hidden, d_out), jnp.float32)
                   * 0.05).astype(dtype)
        self.b2 = (jax.random.normal(k4, (1, d_out), jnp.float32)
                   * 0.01).astype(dtype)

    def __call__(self, x, *, tm=512):
        return mlp_forward_pallas(x, self.w1, self.b1, self.w2, self.b2, tm=tm)

    def parameters(self):
        return [self.w1, self.b1, self.w2, self.b2]


class ColoDDP:
    """JAX analogue of colossalai ColoDDP: forward == zero_grad + module forward."""

    def __init__(self, module, dp_world_size=1):
        self.module = module
        self.dp_world_size = dp_world_size
        # TODO(synk): grad_handle / dist.all_reduce / comm-stream overlap /
        # _saved_grad bookkeeping are backward-pass multi-device logic with no
        # forward-value Pallas equivalent; not implemented here.

    def parameters(self):
        return self.module.parameters()

    def forward(self, *args, **kwargs):
        # self.module.zero_grad(set_to_none=True) is a no-op for forward values
        # in a functional JAX setting.
        return self.module(*args, **kwargs)

    def __call__(self, *args, **kwargs):
        return self.forward(*args, **kwargs)


def _reference_forward(x, m, dtype):
    """Pure-JAX reference of the same forward math (bf16-in / f32-acc)."""
    h = jnp.dot(x, m.w1, preferred_element_type=jnp.float32)
    h = jnp.maximum(h + m.b1.astype(jnp.float32), 0.0).astype(dtype)
    y = (jnp.dot(h, m.w2, preferred_element_type=jnp.float32)
         + m.b2.astype(jnp.float32))
    return y.astype(dtype)


if __name__ == "__main__":
    key = jax.random.PRNGKey(0)
    k_param, k_x1, k_x2 = jax.random.split(key, 3)

    # Lane-dense feature dims (multiples of 128).  Note: 128-wide K/N only
    # saturates v5e's MXU; v6e/v7x's 256x256 MXU wants 256-aligned dims for a
    # scaled-up module.  Kept small here per demo requirements.
    d_in, d_hidden, d_out = 128, 128, 128
    dtype = jnp.bfloat16

    inner = SimpleMLP(k_param, d_in=d_in, d_hidden=d_hidden, d_out=d_out,
                      dtype=dtype)
    model = ColoDDP(inner, dp_world_size=1)

    # --- Check 1: small demo batch, single grid step (tm clamps to batch). ---
    batch = 256
    x = jax.random.normal(k_x1, (batch, d_in), jnp.float32).astype(dtype)
    y = jax.block_until_ready(model(x))
    ref = _reference_forward(x, inner, dtype)
    assert y.shape == (batch, d_out)
    assert jnp.allclose(y.astype(jnp.float32), ref.astype(jnp.float32),
                        atol=1e-2, rtol=1e-2)

    # --- Check 2: ragged batch (batch % tm != 0) with a multi-step grid, to
    # lock in that the padded last tile is row-independent and OOB output
    # writes are dropped. ---
    batch2 = 200
    x2 = jax.random.normal(k_x2, (batch2, d_in), jnp.float32).astype(dtype)
    y2 = jax.block_until_ready(inner(x2, tm=128))
    ref2 = _reference_forward(x2, inner, dtype)
    assert y2.shape == (batch2, d_out)
    assert jnp.allclose(y2.astype(jnp.float32), ref2.astype(jnp.float32),
                        atol=1e-2, rtol=1e-2)

    print("KERNEL_OK")
</pallas_src>

<mosaic_0001>
module attributes {stable_mosaic.version = 11 : i64} {
  func.func @_mlp_fwd_kernel(%arg0: i32, %arg1: memref<256x128xbf16, #tpu.memory_space<vmem>>, %arg2: memref<128x128xbf16, #tpu.memory_space<vmem>>, %arg3: memref<1x128xbf16, #tpu.memory_space<vmem>>, %arg4: memref<128x128xbf16, #tpu.memory_space<vmem>>, %arg5: memref<1x128xbf16, #tpu.memory_space<vmem>>, %arg6: memref<256x128xbf16, #tpu.memory_space<vmem>>) attributes {dimension_semantics = [#tpu.dimension_semantics<parallel>], iteration_bounds = array<i64: 1>, scalar_prefetch = 0 : i64, scratch_operands = 0 : i64, tpu.core_type = #tpu.core_type<tc>, window_params = [{transform_indices = @transform_0, window_bounds = array<i64: 256, 128>}, {pipeline_mode = #tpu.pipeline_mode<synchronous>, transform_indices = @transform_1, window_bounds = array<i64: 128, 128>}, {pipeline_mode = #tpu.pipeline_mode<synchronous>, transform_indices = @transform_2, window_bounds = array<i64: 1, 128>}, {pipeline_mode = #tpu.pipeline_mode<synchronous>, transform_indices = @transform_3, window_bounds = array<i64: 128, 128>}, {pipeline_mode = #tpu.pipeline_mode<synchronous>, transform_indices = @transform_4, window_bounds = array<i64: 1, 128>}, {transform_indices = @transform_5, window_bounds = array<i64: 256, 128>}]} {
    %c0 = arith.constant 0 : index
    %c0_0 = arith.constant 0 : index
    %0 = vector.load %arg1[%c0, %c0_0] : memref<256x128xbf16, #tpu.memory_space<vmem>>, vector<256x128xbf16>
    %c0_1 = arith.constant 0 : index
    %c0_2 = arith.constant 0 : index
    %1 = vector.load %arg2[%c0_1, %c0_2] : memref<128x128xbf16, #tpu.memory_space<vmem>>, vector<128x128xbf16>
    %cst = arith.constant dense<0.000000e+00> : vector<256x128xf32>
    %2 = tpu.matmul %0, %1, %cst {dimension_numbers = #tpu.dot_dimension_numbers<[1], [0], [0], [1], [0, 0, 1, 1], [], []>} : vector<256x128xbf16>, vector<128x128xbf16>, vector<256x128xf32> -> vector<256x128xf32>
    %c0_3 = arith.constant 0 : index
    %c0_4 = arith.constant 0 : index
    %3 = vector.load %arg3[%c0_3, %c0_4] : memref<1x128xbf16, #tpu.memory_space<vmem>>, vector<1x128xbf16>
    %4 = arith.extf %3 : vector<1x128xbf16> to vector<1x128xf32>
    %5 = vector.broadcast %4 : vector<1x128xf32> to vector<256x128xf32>
    %6 = arith.addf %2, %5 : vector<256x128xf32>
    %cst_5 = arith.constant 0.000000e+00 : f32
    %7 = vector.broadcast %cst_5 : f32 to vector<256x128xf32>
    %8 = arith.maximumf %6, %7 : vector<256x128xf32>
    %9 = arith.truncf %8 : vector<256x128xf32> to vector<256x128xbf16>
    %c0_6 = arith.constant 0 : index
    %c0_7 = arith.constant 0 : index
    %10 = vector.load %arg4[%c0_6, %c0_7] : memref<128x128xbf16, #tpu.memory_space<vmem>>, vector<128x128xbf16>
    %cst_8 = arith.constant dense<0.000000e+00> : vector<256x128xf32>
    %11 = tpu.matmul %9, %10, %cst_8 {dimension_numbers = #tpu.dot_dimension_numbers<[1], [0], [0], [1], [0, 0, 1, 1], [], []>} : vector<256x128xbf16>, vector<128x128xbf16>, vector<256x128xf32> -> vector<256x128xf32>
    %c0_9 = arith.constant 0 : index
    %c0_10 = arith.constant 0 : index
    %12 = vector.load %arg5[%c0_9, %c0_10] : memref<1x128xbf16, #tpu.memory_space<vmem>>, vector<1x128xbf16>
    %13 = arith.extf %12 : vector<1x128xbf16> to vector<1x128xf32>
    %14 = vector.broadcast %13 : vector<1x128xf32> to vector<256x128xf32>
    %15 = arith.addf %11, %14 : vector<256x128xf32>
    %16 = arith.truncf %15 : vector<256x128xf32> to vector<256x128xbf16>
    %c0_11 = arith.constant 0 : index
    %c0_12 = arith.constant 0 : index
    %17 = vector.load %arg6[%c0_11, %c0_12] : memref<256x128xbf16, #tpu.memory_space<vmem>>, vector<256x128xbf16>
    tpu.vector_store %arg6[%c0_11, %c0_12], %16 {strides = array<i32>} : memref<256x128xbf16, #tpu.memory_space<vmem>>, vector<256x128xbf16>,
    return
  }
  func.func @transform_0(%arg0: i32) -> (i32, i32) {
    %c0_i32 = arith.constant 0 : i32
    %c0_i32_0 = arith.constant 0 : i32
    return %arg0, %c0_i32 : i32, i32
  }
  func.func @transform_1(%arg0: i32) -> (i32, i32) {
    %c0_i32 = arith.constant 0 : i32
    %c0_i32_0 = arith.constant 0 : i32
    %c0_i32_1 = arith.constant 0 : i32
    return %c0_i32, %c0_i32_0 : i32, i32
  }
  func.func @transform_2(%arg0: i32) -> (i32, i32) {
    %c0_i32 = arith.constant 0 : i32
    %c0_i32_0 = arith.constant 0 : i32
    %c0_i32_1 = arith.constant 0 : i32
    return %c0_i32, %c0_i32_0 : i32, i32
  }
  func.func @transform_3(%arg0: i32) -> (i32, i32) {
    %c0_i32 = arith.constant 0 : i32
    %c0_i32_0 = arith.constant 0 : i32
    %c0_i32_1 = arith.constant 0 : i32
    return %c0_i32, %c0_i32_0 : i32, i32
  }
  func.func @transform_4(%arg0: i32) -> (i32, i32) {
    %c0_i32 = arith.constant 0 : i32
    %c0_i32_0 = arith.constant 0 : i32
    %c0_i32_1 = arith.constant 0 : i32
    return %c0_i32, %c0_i32_0 : i32, i32
  }
  func.func @transform_5(%arg0: i32) -> (i32, i32) {
    %c0_i32 = arith.constant 0 : i32
    %c0_i32_0 = arith.constant 0 : i32
    return %arg0, %c0_i32 : i32, i32
  }
}

</mosaic_0001>

<bundles_post_ra>
// kernel: tpu_custom_call.1
= control target key start
LH: loop header
LB: loop body
LE: loop exit
PB: predicated region body
PF: predicated region fallthrough
CT: control target
= control target key end

     0   :  { %10 = vsyncpa [#allocation3], 0  ;;  %s1479_s0 = inlined_call_operand.hbm [shape: bf16[256,128], index: 0, kind: input, shape index: {}]   ;;  %s1480_s1 = inlined_call_operand.hbm [shape: bf16[128,128], index: 1, kind: input, shape index: {}]   ;;  %s1481_s2 = inlined_call_operand.vmem [shape: bf16[1,128], index: 2, kind: input, shape index: {}]   ;;  %s1482_s3 = inlined_call_operand.hbm [shape: bf16[128,128], index: 3, kind: input, shape index: {}]   ;;  %s1483_s4 = inlined_call_operand.vmem [shape: bf16[1,128], index: 4, kind: input, shape index: {}]   ;;  %s1484_s5 = inlined_call_operand.hbm [shape: bf16[256,128], index: 5, kind: output, shape index: {}]  }
   0x1   :  { %11 = vsyncpa [#allocation6], 0 }
   0x2   :  { %12 = vsyncpa [#allocation4], 0  ;;  %s1338_s18 = smov [#allocation5]   ;;  %s1339_s20 = smov [#allocation2]  }
   0x3   :  { %s30_s19 = sshll.u32 %s1338_s18, 4  ;;  %s18_s21 = sshll.u32 %s1339_s20, 4  ;;  %s31_s19 = int_to_ptr.vmem [resolvable:$true] %s30_s19  ;;  %s19_s21 = int_to_ptr.vmem [resolvable:$true] %s18_s21 }
   0x4   :  { %s1260_s22 = scalar_lea.vmem %s31_s19, 1024  ;;  %p1265_p1 = scmp.lt.s32.totalorder %s31_s19, %s31_s19 }
   0x5   :  { %p1261_p0 = scmp.ne.s32.totalorder %s31_s19, %s1260_s22  ;;  %p1266_p2 = scmp.lt.s32.totalorder %s1260_s22, %s1260_s22 }
   0x7   :  { %p1267_p3 = por %p1266_p2, %p1265_p1 }
   0x9   :  { %p1268_p4 = pnand %p1267_p3, %p1261_p0 }
   0xb   :  { %1271 = shalt.err (!%p1268_p4)
}
   0xc   :  { %s1340_s23 = smov 64   ;;  %s1341_s24 = smov 4  }
   0xd   :  { %36 = dma.hbm_to_vmem [thread:$0]  %s1480_s1, 1024, %s31_s19, [#allocation6], %s1340_s23, %s1340_s23, %s1341_s24  }
   0xe   :  { %s1280_s27 = scalar_lea.vmem %s19_s21, 2048  ;;  %p1285_p6 = scmp.lt.s32.totalorder %s19_s21, %s19_s21 }
   0xf   :  { %p1281_p5 = scmp.ne.s32.totalorder %s19_s21, %s1280_s27  ;;  %p1286_p7 = scmp.lt.s32.totalorder %s1280_s27, %s1280_s27 }
  0x11   :  { %p1287_p8 = por %p1286_p7, %p1285_p6 }
  0x13   :  { %p1288_p9 = pnand %p1287_p8, %p1281_p5 }
  0x15   :  { %1291 = shalt.err (!%p1288_p9)
}
  0x16   :  { %24 = dma.hbm_to_vmem [thread:$0]  %s1479_s0, 2048, %s19_s21, [#allocation3], %s1340_s23, %s1340_s23, %s1341_s24  }
  0x17   :  { %s1342_s30 = smov [#allocation7]  }
  0x18   :  { %s44_s6 = sshll.u32 %s1342_s30, 4  ;;  %s45_s6 = int_to_ptr.vmem [resolvable:$true] %s44_s6 }
  0x19   :  { %s1300_s7 = scalar_lea.vmem %s45_s6, 1024  ;;  %p1305_p11 = scmp.lt.s32.totalorder %s45_s6, %s45_s6 }
  0x1a   :  { %p1301_p10 = scmp.ne.s32.totalorder %s45_s6, %s1300_s7  ;;  %p1306_p12 = scmp.lt.s32.totalorder %s1300_s7, %s1300_s7 }
  0x1c   :  { %p1307_p13 = por %p1306_p12, %p1305_p11 }
  0x1e   :  { %p1308_p0 = pnand %p1307_p13, %p1301_p10 }
  0x20   :  { %1311 = shalt.err (!%p1308_p0)
}
  0x21   :  { %50 = dma.hbm_to_vmem [thread:$0]  %s1482_s3, 1024, %s45_s6, [#allocation6], %s1340_s23, %s1340_s23, %s1341_s24  }
  0x22   :  { %1332 = dma.done.wait [#allocation3], 2048  }
  0x23   :  { %1333 = vsyncadd [#allocation3], 4294965248 }
  0x24   :  { %1334 = dma.done.wait [#allocation6], 2048  }
  0x25   :  { %1335 = vsyncadd [#allocation6], 4294965248  ;;  %v1220_v0 = vld [vmem:[#allocation5 + $0x38] sm:$0xff]   ;;  %v1221_v1 = vld [vmem:[#allocation5 + $0x30] sm:$0xff]   ;;  %v113_v32 = vlaneseq }
  0x26   :  { %1118 = vmatprep.subr.bf16.mxu0 %v1220_v0  ;;  %v1222_v2 = vld [vmem:[#allocation5 + $0x28] sm:$0xff]   ;;  %v1223_v3 = vld [vmem:[#allocation5 + $0x20] sm:$0xff]   ;;  %v1224_v5 = vld [vmem:[#allocation5 + $0x18] sm:$0xff]  }
  0x27   :  { %1119 = vmatpush3.bf16.msra.mxu0 %v1220_v0  ;;  %v1228_v4 = vld [vmem:[#allocation2] sm:$0xff]   ;;  %v1225_v6 = vld [vmem:[#allocation5 + $0x10] sm:$0xff]   ;;  %v1226_v7 = vld [vmem:[#allocation5 + $0x8] sm:$0xff]   ;;  %v1392_v33 = vshrl.u32 %v113_v32, 7 }
  0x28   :  { %1120 = vmatprep.subr.bf16.mxu0 %v1221_v1  ;;  %1134 = vmatprep.mubr.bf16.mxu0 %v1228_v4  ;;  %v1227_v8 = vld [vmem:[#allocation5] sm:$0xff]   ;;  %v1244_v9 = vld [vmem:[#allocation7 + $0x38] sm:$0xff]   ;;  %v1245_v10 = vld [vmem:[#allocation7 + $0x30] sm:$0xff]  }
  0x29   :  { %1166 = vmatprep.subr.bf16.mxu1 %v1244_v9  ;;  %v1246_v11 = vld [vmem:[#allocation7 + $0x28] sm:$0xff]   ;;  %v1230_v13 = vld [vmem:[#allocation2 + $0x10] sm:$0xff]   ;;  %v1247_v14 = vld [vmem:[#allocation7 + $0x20] sm:$0xff]   ;;  %v115_v36 = vsub.s32 0, %v1392_v33 }
  0x2a   :  { %1167 = vmatpush3.bf16.msra.mxu1 %v1244_v9  ;;  %v1229_v12 = vld [vmem:[#allocation2 + $0x8] sm:$0xff]   ;;  %v1248_v15 = vld [vmem:[#allocation7 + $0x18] sm:$0xff]   ;;  %v1232_v17 = vld [vmem:[#allocation2 + $0x20] sm:$0xff]  }
  0x2b   :  { %1121 = vmatpush3.bf16.msra.mxu0 %v1221_v1  ;;  %1168 = vmatprep.subr.bf16.mxu1 %v1245_v10  ;;  %v1231_v16 = vld [vmem:[#allocation2 + $0x18] sm:$0xff]   ;;  %v1233_v18 = vld [vmem:[#allocation2 + $0x28] sm:$0xff]   ;;  %v1234_v19 = vld [vmem:[#allocation2 + $0x30] sm:$0xff]  }
  0x2c   :  { %1122 = vmatprep.subr.bf16.mxu0 %v1222_v2  ;;  %v1235_v20 = vld [vmem:[#allocation2 + $0x38] sm:$0xff]   ;;  %v1236_v21 = vld [vmem:[#allocation2 + $0x40] sm:$0xff]   ;;  %v1237_v22 = vld [vmem:[#allocation2 + $0x48] sm:$0xff]  }
  0x2d   :  { %v1238_v23 = vld [vmem:[#allocation2 + $0x50] sm:$0xff]   ;;  %v1239_v24 = vld [vmem:[#allocation2 + $0x58] sm:$0xff]   ;;  %v1240_v25 = vld [vmem:[#allocation2 + $0x60] sm:$0xff]  }
  0x2e   :  { %1169 = vmatpush3.bf16.msra.mxu1 %v1245_v10  ;;  %v1241_v26 = vld [vmem:[#allocation2 + $0x68] sm:$0xff]   ;;  %v1242_v27 = vld [vmem:[#allocation2 + $0x70] sm:$0xff]   ;;  %v1243_v28 = vld [vmem:[#allocation2 + $0x78] sm:$0xff]  }
  0x2f   :  { %1123 = vmatpush3.bf16.msra.mxu0 %v1222_v2  ;;  %1170 = vmatprep.subr.bf16.mxu1 %v1246_v11  ;;  %v1249_v29 = vld [vmem:[#allocation7 + $0x10] sm:$0xff]   ;;  %v1250_v30 = vld [vmem:[#allocation7 + $0x8] sm:$0xff]   ;;  %v1251_v31 = vld [vmem:[#allocation7] sm:$0xff]  }
  0x30   :  { %1124 = vmatprep.subr.bf16.mxu0 %v1223_v3  ;;  %v111_v34 = vld [vmem:[%s1481_s2] sm:$0x1] }
  0x31   :  { %v112_v35 = vunpack.c.l.bf16 %v111_v34 }
  0x32   :  { %1171 = vmatpush3.bf16.msra.mxu1 %v1246_v11 }
  0x33   :  { %1125 = vmatpush3.bf16.msra.mxu0 %v1223_v3  ;;  %1172 = vmatprep.subr.bf16.mxu1 %v1247_v14  ;;  %v1400_v38 = vrot.slane %v112_v35, %v115_v36 }
  0x34   :  { %1126 = vmatprep.subr.bf16.mxu0 %v1224_v5 }
  0x36   :  { %1173 = vmatpush3.bf16.msra.mxu1 %v1247_v14 }
  0x37   :  { %1127 = vmatpush3.bf16.msra.mxu0 %v1224_v5  ;;  %1174 = vmatprep.subr.bf16.mxu1 %v1248_v15 }
  0x38   :  { %1128 = vmatprep.subr.bf16.mxu0 %v1225_v6 }
  0x3a   :  { %1175 = vmatpush3.bf16.msra.mxu1 %v1248_v15 }
  0x3b   :  { %1129 = vmatpush3.bf16.msra.mxu0 %v1225_v6  ;;  %1176 = vmatprep.subr.bf16.mxu1 %v1249_v29 }
  0x3c   :  { %1130 = vmatprep.subr.bf16.mxu0 %v1226_v7 }
  0x3e   :  { %1177 = vmatpush3.bf16.msra.mxu1 %v1249_v29 }
  0x3f   :  { %1131 = vmatpush3.bf16.msra.mxu0 %v1226_v7  ;;  %1178 = vmatprep.subr.bf16.mxu1 %v1250_v30 }
  0x40   :  { %1132 = vmatprep.subr.bf16.mxu0 %v1227_v8 }
  0x42   :  { %1179 = vmatpush3.bf16.msra.mxu1 %v1250_v30 }
  0x43   :  { %1133 = vmatpush3.bf16.msra.mxu0 %v1227_v8  ;;  %1180 = vmatprep.subr.bf16.mxu1 %v1251_v31 }
  0x46   :  { %1135 = vmatmul.mubr.bf16.vlgmr.msra.gmra.mxu0 %v1229_v12  ;;  %1181 = vmatpush3.bf16.msra.mxu1 %v1251_v31 }
  0x47   :  { %1138 = vmatprep.mubr.bf16.mxu0 %v1230_v13 }
  0x4e   :  { %1139 = vmatmul.mubr.bf16.gmra.mxu0 %v1231_v16 }
  0x4f   :  { %1142 = vmatprep.mubr.bf16.mxu0 %v1232_v17 }
  0x56   :  { %1143 = vmatmul.mubr.bf16.gmra.mxu0 %v1233_v18 }
  0x57   :  { %1146 = vmatprep.mubr.bf16.mxu0 %v1234_v19 }
  0x5e   :  { %1147 = vmatmul.mubr.bf16.gmra.mxu0 %v1235_v20 }
  0x5f   :  { %1150 = vmatprep.mubr.bf16.mxu0 %v1236_v21 }
  0x66   :  { %1151 = vmatmul.mubr.bf16.gmra.mxu0 %v1237_v22 }
  0x67   :  { %1154 = vmatprep.mubr.bf16.mxu0 %v1238_v23 }
  0x6e   :  { %1155 = vmatmul.mubr.bf16.gmra.mxu0 %v1239_v24 }
  0x6f   :  { %1158 = vmatprep.mubr.bf16.mxu0 %v1240_v25 }
  0x76   :  { %1159 = vmatmul.mubr.bf16.gmra.mxu0 %v1241_v26 }
  0x77   :  { %1162 = vmatprep.mubr.bf16.mxu0 %v1242_v27 }
  0x7e   :  { %1163 = vmatmul.mubr.bf16.gmra.mxu0 %v1243_v28 }
 0x106   :  { %v1136_v37 = vpop.f32.mrf.mxu0 }
 0x107   :  { %v304_v43 = vadd.f32 %v1136_v37, %v1400_v38 }
 0x108   :  { %v295_v39 = vpop.f32.mrf.mxu0 }
 0x109   :  { %v296_v41 = vadd.f32 %v295_v39, %v1400_v38  ;;  %v424_v50 = vmax.f32 %v304_v43, 0.0 }
 0x10a   :  { %v1137_v40 = vpop.f32.mrf.mxu0 }
 0x10b   :  { %v307_v42 = vadd.f32 %v1137_v40, %v1400_v38  ;;  %v422_v48 = vmax.f32 %v296_v41, 0.0 }
 0x10c   :  { %v298_v44 = vpop.f32.mrf.mxu0 }
 0x10d   :  { %v299_v45 = vadd.f32 %v298_v44, %v1400_v38  ;;  %v425_v46 = vmax.f32 %v307_v42, 0.0 }
 0x10e   :  { %v1140_v47 = vpop.f32.mrf.mxu0 }
 0x10f   :  { %v423_v49 = vmax.f32 %v299_v45, 0.0  ;;  %v455_v53 = vpack.c.bf16 %v425_v46, %v424_v50  ;;  %v320_v57 = vadd.f32 %v1140_v47, %v1400_v38 }
 0x110   :  { %v311_v51 = vpop.f32.mrf.mxu0 }
 0x111   :  { %v454_v52 = vpack.c.bf16 %v423_v49, %v422_v48  ;;  %v312_v55 = vadd.f32 %v311_v51, %v1400_v38  ;;  %v428_v0 = vmax.f32 %v320_v57, 0.0 }
 0x112   :  { %v1141_v54 = vpop.f32.mrf.mxu0 }
 0x113   :  { %v323_v56 = vadd.f32 %v1141_v54, %v1400_v38  ;;  %1182 = vmatprep.mubr.bf16.mxu1 %v454_v52  ;;  %v426_v62 = vmax.f32 %v312_v55, 0.0 }
 0x114   :  { %v314_v58 = vpop.f32.mrf.mxu0  ;;  %1183 = vmatmul.mubr.bf16.vlgmr.msra.gmra.mxu1 %v455_v53 }
 0x115   :  { %v315_v59 = vadd.f32 %v314_v58, %v1400_v38  ;;  %v429_v60 = vmax.f32 %v323_v56, 0.0 }
 0x116   :  { %v1144_v61 = vpop.f32.mrf.mxu0 }
 0x117   :  { %v427_v63 = vmax.f32 %v315_v59, 0.0  ;;  %v457_v3 = vpack.c.bf16 %v429_v60, %v428_v0  ;;  %v336_v7 = vadd.f32 %v1144_v61, %v1400_v38 }
 0x118   :  { %v327_v1 = vpop.f32.mrf.mxu0 }
 0x119   :  { %v456_v2 = vpack.c.bf16 %v427_v63, %v426_v62  ;;  %v328_v5 = vadd.f32 %v327_v1, %v1400_v38  ;;  %v432_v14 = vmax.f32 %v336_v7, 0.0 }
 0x11a   :  { %v1145_v4 = vpop.f32.mrf.mxu0 }
 0x11b   :  { %v339_v6 = vadd.f32 %v1145_v4, %v1400_v38  ;;  %1186 = vmatprep.mubr.bf16.mxu1 %v456_v2  ;;  %v430_v12 = vmax.f32 %v328_v5, 0.0 }
 0x11c   :  { %v330_v8 = vpop.f32.mrf.mxu0  ;;  %1187 = vmatmul.mubr.bf16.gmra.mxu1 %v457_v3 }
 0x11d   :  { %v331_v9 = vadd.f32 %v330_v8, %v1400_v38  ;;  %v433_v10 = vmax.f32 %v339_v6, 0.0 }
 0x11e   :  { %v1148_v11 = vpop.f32.mrf.mxu0 }
 0x11f   :  { %v431_v13 = vmax.f32 %v331_v9, 0.0  ;;  %v459_v17 = vpack.c.bf16 %v433_v10, %v432_v14  ;;  %v352_v21 = vadd.f32 %v1148_v11, %v1400_v38 }
 0x120   :  { %v343_v15 = vpop.f32.mrf.mxu0 }
 0x121   :  { %v458_v16 = vpack.c.bf16 %v431_v13, %v430_v12  ;;  %v344_v19 = vadd.f32 %v343_v15, %v1400_v38  ;;  %v436_v28 = vmax.f32 %v352_v21, 0.0 }
 0x122   :  { %v1149_v18 = vpop.f32.mrf.mxu0 }
 0x123   :  { %v355_v20 = vadd.f32 %v1149_v18, %v1400_v38  ;;  %1190 = vmatprep.mubr.bf16.mxu1 %v458_v16  ;;  %v434_v26 = vmax.f32 %v344_v19, 0.0 }
 0x124   :  { %v346_v22 = vpop.f32.mrf.mxu0  ;;  %1191 = vmatmul.mubr.bf16.gmra.mxu1 %v459_v17 }
 0x125   :  { %v347_v23 = vadd.f32 %v346_v22, %v1400_v38  ;;  %v437_v24 = vmax.f32 %v355_v20, 0.0 }
 0x126   :  { %v1152_v25 = vpop.f32.mrf.mxu0 }
 0x127   :  { %v435_v27 = vmax.f32 %v347_v23, 0.0  ;;  %v461_v31 = vpack.c.bf16 %v437_v24, %v436_v28  ;;  %v368_v37 = vadd.f32 %v1152_v25, %v1400_v38  ;;  %v486_v25 = vld [vmem:[%s1483_s4] sm:$0x1]  ;;  %s1343_s4 = smov [#allocation8]  }
 0x128   :  { %v359_v29 = vpop.f32.mrf.mxu0  ;;  %s866_s10 = sshll.u32 %s1343_s4, 4  ;;  %s867_s10 = int_to_ptr.vmem [resolvable:$true] %s866_s10 }
 0x129   :  { %v460_v30 = vpack.c.bf16 %v435_v27, %v434_v26  ;;  %v360_v34 = vadd.f32 %v359_v29, %v1400_v38  ;;  %v440_v45 = vmax.f32 %v368_v37, 0.0  ;;  %v487_v26 = vunpack.c.l.bf16 %v486_v25  ;;  %s1312_s11 = scalar_lea.vmem %s867_s10, 2048  ;;  %p1317_p2 = scmp.lt.s32.totalorder %s867_s10, %s867_s10 }
 0x12a   :  { %v1153_v32 = vpop.f32.mrf.mxu0  ;;  %p1313_p1 = scmp.ne.s32.totalorder %s867_s10, %s1312_s11  ;;  %p1318_p3 = scmp.lt.s32.totalorder %s1312_s11, %s1312_s11 }
 0x12b   :  { %v371_v35 = vadd.f32 %v1153_v32, %v1400_v38  ;;  %1194 = vmatprep.mubr.bf16.mxu1 %v460_v30  ;;  %v438_v43 = vmax.f32 %v360_v34, 0.0  ;;  %v1439_v28 = vrot.slane %v487_v26, %v115_v36 }
 0x12c   :  { %v362_v39 = vpop.f32.mrf.mxu0  ;;  %1195 = vmatmul.mubr.bf16.gmra.mxu1 %v461_v31  ;;  %p1319_p4 = por %p1318_p3, %p1317_p2 }
 0x12d   :  { %v363_v40 = vadd.f32 %v362_v39, %v1400_v38  ;;  %v441_v41 = vmax.f32 %v371_v35, 0.0 }
 0x12e   :  { %v1156_v42 = vpop.f32.mrf.mxu0  ;;  %p1320_p5 = pnand %p1319_p4, %p1313_p1 }
 0x12f   :  { %v439_v44 = vmax.f32 %v363_v40, 0.0  ;;  %v463_v48 = vpack.c.bf16 %v441_v41, %v440_v45  ;;  %v384_v52 = vadd.f32 %v1156_v42, %v1400_v38 }
 0x130   :  { %v375_v46 = vpop.f32.mrf.mxu0 }
 0x131   :  { %v462_v47 = vpack.c.bf16 %v439_v44, %v438_v43  ;;  %v376_v50 = vadd.f32 %v375_v46, %v1400_v38  ;;  %v444_v59 = vmax.f32 %v384_v52, 0.0 }
 0x132   :  { %v1157_v49 = vpop.f32.mrf.mxu0 }
 0x133   :  { %v387_v51 = vadd.f32 %v1157_v49, %v1400_v38  ;;  %1198 = vmatprep.mubr.bf16.mxu1 %v462_v47  ;;  %v442_v57 = vmax.f32 %v376_v50, 0.0 }
 0x134   :  { %v378_v53 = vpop.f32.mrf.mxu0  ;;  %1199 = vmatmul.mubr.bf16.gmra.mxu1 %v463_v48 }
 0x135   :  { %v379_v54 = vadd.f32 %v378_v53, %v1400_v38  ;;  %v445_v55 = vmax.f32 %v387_v51, 0.0 }
 0x136   :  { %v1160_v56 = vpop.f32.mrf.mxu0 }
 0x137   :  { %v443_v58 = vmax.f32 %v379_v54, 0.0  ;;  %v465_v62 = vpack.c.bf16 %v445_v55, %v444_v59  ;;  %v400_v2 = vadd.f32 %v1160_v56, %v1400_v38 }
 0x138   :  { %v391_v60 = vpop.f32.mrf.mxu0 }
 0x139   :  { %v464_v61 = vpack.c.bf16 %v443_v58, %v442_v57  ;;  %v392_v0 = vadd.f32 %v391_v60, %v1400_v38  ;;  %v448_v9 = vmax.f32 %v400_v2, 0.0 }
 0x13a   :  { %v1161_v63 = vpop.f32.mrf.mxu0 }
 0x13b   :  { %v403_v1 = vadd.f32 %v1161_v63, %v1400_v38  ;;  %1202 = vmatprep.mubr.bf16.mxu1 %v464_v61  ;;  %v446_v7 = vmax.f32 %v392_v0, 0.0 }
 0x13c   :  { %v394_v3 = vpop.f32.mrf.mxu0  ;;  %1203 = vmatmul.mubr.bf16.gmra.mxu1 %v465_v62 }
 0x13d   :  { %v395_v4 = vadd.f32 %v394_v3, %v1400_v38  ;;  %v449_v5 = vmax.f32 %v403_v1, 0.0 }
 0x13e   :  { %v1164_v6 = vpop.f32.mrf.mxu0 }
 0x13f   :  { %v447_v8 = vmax.f32 %v395_v4, 0.0  ;;  %v467_v12 = vpack.c.bf16 %v449_v5, %v448_v9  ;;  %v416_v16 = vadd.f32 %v1164_v6, %v1400_v38 }
 0x140   :  { %v407_v10 = vpop.f32.mrf.mxu0 }
 0x141   :  { %v466_v11 = vpack.c.bf16 %v447_v8, %v446_v7  ;;  %v408_v14 = vadd.f32 %v407_v10, %v1400_v38  ;;  %v452_v22 = vmax.f32 %v416_v16, 0.0 }
 0x142   :  { %v1165_v13 = vpop.f32.mrf.mxu0 }
 0x143   :  { %v419_v15 = vadd.f32 %v1165_v13, %v1400_v38  ;;  %1206 = vmatprep.mubr.bf16.mxu1 %v466_v11  ;;  %v450_v20 = vmax.f32 %v408_v14, 0.0 }
 0x144   :  { %v410_v17 = vpop.f32.mrf.mxu0  ;;  %1207 = vmatmul.mubr.bf16.gmra.mxu1 %v467_v12 }
 0x145   :  { %v411_v18 = vadd.f32 %v410_v17, %v1400_v38  ;;  %v453_v19 = vmax.f32 %v419_v15, 0.0 }
 0x147   :  { %v451_v21 = vmax.f32 %v411_v18, 0.0  ;;  %v469_v24 = vpack.c.bf16 %v453_v19, %v452_v22 }
 0x149   :  { %v468_v23 = vpack.c.bf16 %v451_v21, %v450_v20 }
 0x14b   :  { %1210 = vmatprep.mubr.bf16.mxu1 %v468_v23 }
 0x14c   :  { %1211 = vmatmul.mubr.bf16.gmra.mxu1 %v469_v24 }
 0x1d4   :  { %v1184_v27 = vpop.f32.mrf.mxu1 }
 0x1d5   :  { %v583_v30 = vadd.f32 %v1184_v27, %v1439_v28 }
 0x1d6   :  { %v574_v29 = vpop.f32.mrf.mxu1 }
 0x1d7   :  { %v575_v34 = vadd.f32 %v574_v29, %v1439_v28 }
 0x1d8   :  { %v1185_v38 = vpop.f32.mrf.mxu1 }
 0x1d9   :  { %v586_v31 = vadd.f32 %v1185_v38, %v1439_v28 }
 0x1da   :  { %v577_v32 = vpop.f32.mrf.mxu1 }
 0x1db   :  { %v983_v35 = vpack.c.bf16 %v586_v31, %v583_v30  ;;  %v578_v37 = vadd.f32 %v577_v32, %v1439_v28 }
 0x1dc   :  { %v1188_v39 = vpop.f32.mrf.mxu1 }
 0x1dd   :  { %1055 = vst [vmem:[#allocation8 + $0x8] sm:$0xff] %v983_v35   ;;  %v978_v40 = vpack.c.bf16 %v578_v37, %v575_v34  ;;  %v599_v36 = vadd.f32 %v1188_v39, %v1439_v28 }
 0x1de   :  { %v590_v41 = vpop.f32.mrf.mxu1 }
 0x1df   :  { %979 = vst [vmem:[#allocation8] sm:$0xff] %v978_v40   ;;  %v591_v44 = vadd.f32 %v590_v41, %v1439_v28 }
 0x1e0   :  { %v1189_v33 = vpop.f32.mrf.mxu1 }
 0x1e1   :  { %v602_v42 = vadd.f32 %v1189_v33, %v1439_v28 }
 0x1e2   :  { %v593_v43 = vpop.f32.mrf.mxu1 }
 0x1e3   :  { %v993_v45 = vpack.c.bf16 %v602_v42, %v599_v36  ;;  %v594_v46 = vadd.f32 %v593_v43, %v1439_v28 }
 0x1e4   :  { %v1192_v47 = vpop.f32.mrf.mxu1 }
 0x1e5   :  { %1057 = vst [vmem:[#allocation8 + $0x18] sm:$0xff] %v993_v45   ;;  %v988_v48 = vpack.c.bf16 %v594_v46, %v591_v44  ;;  %v615_v51 = vadd.f32 %v1192_v47, %v1439_v28 }
 0x1e6   :  { %v606_v49 = vpop.f32.mrf.mxu1 }
 0x1e7   :  { %1056 = vst [vmem:[#allocation8 + $0x10] sm:$0xff] %v988_v48   ;;  %v607_v54 = vadd.f32 %v606_v49, %v1439_v28 }
 0x1e8   :  { %v1193_v50 = vpop.f32.mrf.mxu1 }
 0x1e9   :  { %v618_v52 = vadd.f32 %v1193_v50, %v1439_v28 }
 0x1ea   :  { %v609_v53 = vpop.f32.mrf.mxu1 }
 0x1eb   :  { %v1003_v55 = vpack.c.bf16 %v618_v52, %v615_v51  ;;  %v610_v56 = vadd.f32 %v609_v53, %v1439_v28 }
 0x1ec   :  { %v1196_v57 = vpop.f32.mrf.mxu1 }
 0x1ed   :  { %1059 = vst [vmem:[#allocation8 + $0x28] sm:$0xff] %v1003_v55   ;;  %v998_v58 = vpack.c.bf16 %v610_v56, %v607_v54  ;;  %v631_v61 = vadd.f32 %v1196_v57, %v1439_v28 }
 0x1ee   :  { %v622_v59 = vpop.f32.mrf.mxu1 }
 0x1ef   :  { %1058 = vst [vmem:[#allocation8 + $0x20] sm:$0xff] %v998_v58   ;;  %v623_v0 = vadd.f32 %v622_v59, %v1439_v28 }
 0x1f0   :  { %v1197_v60 = vpop.f32.mrf.mxu1 }
 0x1f1   :  { %v634_v62 = vadd.f32 %v1197_v60, %v1439_v28 }
 0x1f2   :  { %v625_v63 = vpop.f32.mrf.mxu1 }
 0x1f3   :  { %v1013_v1 = vpack.c.bf16 %v634_v62, %v631_v61  ;;  %v626_v2 = vadd.f32 %v625_v63, %v1439_v28 }
 0x1f4   :  { %v1200_v3 = vpop.f32.mrf.mxu1 }
 0x1f5   :  { %1061 = vst [vmem:[#allocation8 + $0x38] sm:$0xff] %v1013_v1   ;;  %v1008_v4 = vpack.c.bf16 %v626_v2, %v623_v0  ;;  %v647_v7 = vadd.f32 %v1200_v3, %v1439_v28 }
 0x1f6   :  { %v638_v5 = vpop.f32.mrf.mxu1 }
 0x1f7   :  { %1060 = vst [vmem:[#allocation8 + $0x30] sm:$0xff] %v1008_v4   ;;  %v639_v10 = vadd.f32 %v638_v5, %v1439_v28 }
 0x1f8   :  { %v1201_v6 = vpop.f32.mrf.mxu1 }
 0x1f9   :  { %v650_v8 = vadd.f32 %v1201_v6, %v1439_v28 }
 0x1fa   :  { %v641_v9 = vpop.f32.mrf.mxu1 }
 0x1fb   :  { %v1023_v11 = vpack.c.bf16 %v650_v8, %v647_v7  ;;  %v642_v12 = vadd.f32 %v641_v9, %v1439_v28 }
 0x1fc   :  { %v1204_v13 = vpop.f32.mrf.mxu1 }
 0x1fd   :  { %1063 = vst [vmem:[#allocation8 + $0x48] sm:$0xff] %v1023_v11   ;;  %v1018_v14 = vpack.c.bf16 %v642_v12, %v639_v10  ;;  %v663_v17 = vadd.f32 %v1204_v13, %v1439_v28 }
 0x1fe   :  { %v654_v15 = vpop.f32.mrf.mxu1 }
 0x1ff   :  { %1062 = vst [vmem:[#allocation8 + $0x40] sm:$0xff] %v1018_v14   ;;  %v655_v20 = vadd.f32 %v654_v15, %v1439_v28 }
 0x200   :  { %v1205_v16 = vpop.f32.mrf.mxu1 }
 0x201   :  { %v666_v18 = vadd.f32 %v1205_v16, %v1439_v28 }
 0x202   :  { %v657_v19 = vpop.f32.mrf.mxu1 }
 0x203   :  { %v1033_v21 = vpack.c.bf16 %v666_v18, %v663_v17  ;;  %v658_v22 = vadd.f32 %v657_v19, %v1439_v28 }
 0x204   :  { %v1208_v23 = vpop.f32.mrf.mxu1 }
 0x205   :  { %1065 = vst [vmem:[#allocation8 + $0x58] sm:$0xff] %v1033_v21   ;;  %v1028_v24 = vpack.c.bf16 %v658_v22, %v655_v20  ;;  %v679_v27 = vadd.f32 %v1208_v23, %v1439_v28 }
 0x206   :  { %v670_v25 = vpop.f32.mrf.mxu1 }
 0x207   :  { %1064 = vst [vmem:[#allocation8 + $0x50] sm:$0xff] %v1028_v24   ;;  %v671_v30 = vadd.f32 %v670_v25, %v1439_v28 }
 0x208   :  { %v1209_v26 = vpop.f32.mrf.mxu1 }
 0x209   :  { %v682_v29 = vadd.f32 %v1209_v26, %v1439_v28 }
 0x20a   :  { %v673_v38 = vpop.f32.mrf.mxu1 }
 0x20b   :  { %v1043_v31 = vpack.c.bf16 %v682_v29, %v679_v27  ;;  %v674_v32 = vadd.f32 %v673_v38, %v1439_v28 }
 0x20c   :  { %v1212_v34 = vpop.f32.mrf.mxu1 }
 0x20d   :  { %1067 = vst [vmem:[#allocation8 + $0x68] sm:$0xff] %v1043_v31   ;;  %v1038_v35 = vpack.c.bf16 %v674_v32, %v671_v30  ;;  %v695_v40 = vadd.f32 %v1212_v34, %v1439_v28 }
 0x20e   :  { %v686_v37 = vpop.f32.mrf.mxu1 }
 0x20f   :  { %1066 = vst [vmem:[#allocation8 + $0x60] sm:$0xff] %v1038_v35   ;;  %v687_v36 = vadd.f32 %v686_v37, %v1439_v28 }
 0x210   :  { %v1213_v39 = vpop.f32.mrf.mxu1 }
 0x211   :  { %v698_v41 = vadd.f32 %v1213_v39, %v1439_v28 }
 0x212   :  { %v689_v33 = vpop.f32.mrf.mxu1 }
 0x213   :  { %v1053_v42 = vpack.c.bf16 %v698_v41, %v695_v40  ;;  %v690_v43 = vadd.f32 %v689_v33, %v1439_v28 }
 0x215   :  { %1069 = vst [vmem:[#allocation8 + $0x78] sm:$0xff] %v1053_v42   ;;  %v1048_v44 = vpack.c.bf16 %v690_v43, %v687_v36 }
 0x217   :  { %1068 = vst [vmem:[#allocation8 + $0x70] sm:$0xff] %v1048_v44  }
 0x218   :  { %1323 = shalt.err (!%p1320_p5)
}
 0x219   :  { %872 = dma.vmem_to_hbm [thread:$0]  %s867_s10, 2048, %s1484_s5, [#allocation4], %s1340_s23, %s1340_s23, %s1341_s24  }
 0x21a   :  { %1336 = dma.done.wait [#allocation4], 2048  }
 0x21b   :  { %1337 = vsyncadd [#allocation4], 4294965248 }
 0x21c   :  { %876 = vsyncpa [#allocation3], 1 }
 0x21d   :  { %877 = vsyncpa [#allocation6], 1 }
 0x21e   :  { %878 = vsyncpa [#allocation4], 1 }

</bundles_post_ra>
